<compile_context>
chip_gen: v7x
topology: tpu7x:2x2x1
jax: 0.10.0
libtpu: 0.0.40
codegen_flags: <defaults>
</compile_context>

<pallas_src>
import jax
import jax.numpy as jnp
from jax import lax
from jax.experimental import pallas as pl
from jax.experimental.pallas import tpu as pltpu

INPUT_SIZE = 3
HIDDEN_SIZE = 64
OUTPUT_SIZE = 3

IN_PAD = 8        # f32 sublane quantum; K of the first matmul after in-kernel widening
HID_PAD = 128     # lane-aligned hidden width (zero-padded; zeros stay zero through ReLU)
W3_COL_PAD = 128  # w3 padded to a full lane tile; result sliced to 3 cols in-kernel
MAX_TM = 1024     # batch rows per grid step (amortizes per-step overhead, still tiny VMEM)


def _mlp_kernel(x_ref, w1_ref, b1_ref, w2_ref, b2_ref, w3_ref, b3_ref, o_ref, xp_ref):
    """Fused 3-layer MLP + per-column ReLU head on one (tm, *) batch tile.

    Tile shapes (VMEM):
      x:  (tm, 3)  f32          xp (scratch): (tm, 8) f32
      w1: (8, 128) f32          b1: (1, 128) f32
      w2: (128, 128) bf16       b2: (1, 128) f32
      w3: (128, 128) bf16       b3: (1, 128) f32
      o:  (tm, 3)  f32
    """
    # Zero-widen x from 3 -> 8 features in VMEM (replaces a standalone XLA pad op).
    xp_ref[...] = jnp.zeros_like(xp_ref)
    xp_ref[:, :INPUT_SIZE] = x_ref[...]
    x = xp_ref[...]

    # Layer 1: Linear + ReLU (Dropout is identity at inference).
    h1 = jnp.dot(x, w1_ref[...], preferred_element_type=jnp.float32) + b1_ref[...]
    h1 = jnp.maximum(h1, 0.0)

    # Layer 2: Linear + ReLU. bf16 MXU operands, f32 accumulate, f32 epilogue.
    h2 = jnp.dot(h1.astype(jnp.bfloat16), w2_ref[...],
                 preferred_element_type=jnp.float32) + b2_ref[...]
    h2 = jnp.maximum(h2, 0.0)

    # Layer 3: Linear.
    out = jnp.dot(h2.astype(jnp.bfloat16), w3_ref[...],
                  preferred_element_type=jnp.float32) + b3_ref[...]

    # Business head on the 3 real columns: relu(col 0), identity(col 1), relu(col 2).
    out = out[:, :OUTPUT_SIZE]
    col = lax.broadcasted_iota(jnp.int32, out.shape, dimension=1)
    out = jnp.where(col != 1, jnp.maximum(out, 0.0), out)
    o_ref[...] = out.astype(o_ref.dtype)


def _pad2d(a, rows, cols):
    r, c = a.shape
    return jnp.pad(a, ((0, rows - r), (0, cols - c)))


def prepare_params(params):
    """Pad/cast weights & biases once (hoisted out of the forward pass)."""
    w1, b1, w2, b2, w3, b3 = params
    return (
        _pad2d(w1.astype(jnp.float32), IN_PAD, HID_PAD),                      # (8, 128) f32
        _pad2d(b1.reshape(1, -1).astype(jnp.float32), 1, HID_PAD),            # (1, 128) f32
        _pad2d(w2.astype(jnp.float32), HID_PAD, HID_PAD).astype(jnp.bfloat16),
        _pad2d(b2.reshape(1, -1).astype(jnp.float32), 1, HID_PAD),
        _pad2d(w3.astype(jnp.float32), HID_PAD, W3_COL_PAD).astype(jnp.bfloat16),
        _pad2d(b3.reshape(1, -1).astype(jnp.float32), 1, W3_COL_PAD),
    )


def _run_kernel(x, padded_params):
    """x: (B, 3) f32 with B >= 8. Returns (B, 3) f32."""
    w1p, b1p, w2p, b2p, w3p, b3p = padded_params
    B = x.shape[0]

    b8 = ((B + 7) // 8) * 8
    # >= 2 grid steps when there is enough work so both v7x TensorCores get rows
    # (grid steps are sharded via dimension_semantics=("parallel",)); on v5e/v6e the
    # grid is a sequential loop and the extra step costs ~0.35 us.
    min_steps = 2 if b8 >= 32 else 1
    steps = max(min_steps, pl.cdiv(b8, MAX_TM))
    tm = ((pl.cdiv(b8, steps) + 7) // 8) * 8
    tm = min(tm, (B // 8) * 8)   # keep block <= array; ragged tail handled by OOB masking
    grid = (pl.cdiv(B, tm),)

    const = lambda i: (0, 0)     # weights/biases stay resident in VMEM across the grid
    return pl.pallas_call(
        _mlp_kernel,
        out_shape=jax.ShapeDtypeStruct((B, OUTPUT_SIZE), jnp.float32),
        grid=grid,
        in_specs=[
            pl.BlockSpec((tm, INPUT_SIZE), lambda i: (i, 0)),   # x, tiled along batch
            pl.BlockSpec((IN_PAD, HID_PAD), const),             # w1
            pl.BlockSpec((1, HID_PAD), const),                  # b1
            pl.BlockSpec((HID_PAD, HID_PAD), const),            # w2
            pl.BlockSpec((1, HID_PAD), const),                  # b2
            pl.BlockSpec((HID_PAD, W3_COL_PAD), const),         # w3
            pl.BlockSpec((1, W3_COL_PAD), const),               # b3
        ],
        out_specs=pl.BlockSpec((tm, OUTPUT_SIZE), lambda i: (i, 0)),
        scratch_shapes=[pltpu.VMEM((tm, IN_PAD), jnp.float32)],
        compiler_params=pltpu.CompilerParams(
            dimension_semantics=("parallel",),
        ),
    )(x, w1p, b1p, w2p, b2p, w3p, b3p)


def improved_business_mlp_forward(x, padded_params):
    """x: (B, 3) -> (B, 3) float32."""
    B = x.shape[0]
    x = x.astype(jnp.float32)
    if B == 0:
        return jnp.zeros((0, OUTPUT_SIZE), jnp.float32)
    if B < 8:
        # Tiny batches: pad rows to the 8-sublane minimum (negligible cost), then slice.
        xp = jnp.pad(x, ((0, 8 - B), (0, 0)))
        return _run_kernel(xp, padded_params)[:B]
    return _run_kernel(x, padded_params)


def init_params(key):
    """Xavier-uniform weights (matching nn.init.xavier_uniform_), zero biases.

    Weights are stored (in, out) == transpose of torch's (out, in); the xavier bound
    sqrt(6/(fan_in+fan_out)) is symmetric so the distribution matches.
    """
    k1, k2, k3 = jax.random.split(key, 3)

    def xavier(k, fan_in, fan_out):
        bound = (6.0 / (fan_in + fan_out)) ** 0.5
        return jax.random.uniform(
            k, (fan_in, fan_out), dtype=jnp.float32, minval=-bound, maxval=bound
        )

    w1 = xavier(k1, INPUT_SIZE, HIDDEN_SIZE)
    b1 = jnp.zeros((HIDDEN_SIZE,), jnp.float32)
    w2 = xavier(k2, HIDDEN_SIZE, HIDDEN_SIZE)
    b2 = jnp.zeros((HIDDEN_SIZE,), jnp.float32)
    w3 = xavier(k3, HIDDEN_SIZE, OUTPUT_SIZE)
    b3 = jnp.zeros((OUTPUT_SIZE,), jnp.float32)
    return (w1, b1, w2, b2, w3, b3)


def _reference_forward(x, params):
    """Pure-JAX reference at Precision.HIGHEST (true f32) for correctness checks."""
    w1, b1, w2, b2, w3, b3 = params
    dot = lambda a, b: jnp.dot(a, b, precision=lax.Precision.HIGHEST)
    h1 = jnp.maximum(dot(x, w1) + b1, 0.0)
    h2 = jnp.maximum(dot(h1, w2) + b2, 0.0)
    out = dot(h2, w3) + b3
    modal = jnp.maximum(out[:, 0], 0.0)
    profit = out[:, 1]
    rugi = jnp.maximum(out[:, 2], 0.0)
    return jnp.stack([modal, profit, rugi], axis=1)


if __name__ == "__main__":
    key = jax.random.PRNGKey(0)
    k_params, k_x, k_x2 = jax.random.split(key, 3)

    params = init_params(k_params)
    padded_params = prepare_params(params)  # padded/cast once, reused every forward

    # Kernel matmuls run with bf16 MXU operands (f32 accumulate); compare against the
    # exact-f32 reference with a bf16-level tolerance.
    ATOL, RTOL = 3e-2, 5e-2

    # Tiny batch (exercises the padded small-batch path).
    x = jax.random.normal(k_x, (2, INPUT_SIZE), dtype=jnp.float32)
    out = jax.block_until_ready(improved_business_mlp_forward(x, padded_params))
    ref = _reference_forward(x, params)
    assert out.shape == (2, OUTPUT_SIZE)
    assert jnp.allclose(out, ref, atol=ATOL, rtol=RTOL)

    # Larger, non-multiple-of-8 batch: multi-step grid with a ragged last tile.
    x2 = jax.random.normal(k_x2, (300, INPUT_SIZE), dtype=jnp.float32)
    out2 = jax.block_until_ready(improved_business_mlp_forward(x2, padded_params))
    ref2 = _reference_forward(x2, params)
    assert out2.shape == (300, OUTPUT_SIZE)
    assert jnp.allclose(out2, ref2, atol=ATOL, rtol=RTOL)

    print("KERNEL_OK")
</pallas_src>

<mosaic_0001>
module attributes {stable_mosaic.version = 11 : i64} {
  func.func @_mlp_kernel(%arg0: i32, %arg1: memref<8x3xf32, #tpu.memory_space<vmem>>, %arg2: memref<8x128xf32, #tpu.memory_space<vmem>>, %arg3: memref<1x128xf32, #tpu.memory_space<vmem>>, %arg4: memref<128x128xbf16, #tpu.memory_space<vmem>>, %arg5: memref<1x128xf32, #tpu.memory_space<vmem>>, %arg6: memref<128x128xbf16, #tpu.memory_space<vmem>>, %arg7: memref<1x128xf32, #tpu.memory_space<vmem>>, %arg8: memref<8x3xf32, #tpu.memory_space<vmem>>, %arg9: memref<8x8xf32, #tpu.memory_space<vmem>>) attributes {dimension_semantics = [#tpu.dimension_semantics<parallel>], iteration_bounds = array<i64: 1>, scalar_prefetch = 0 : i64, scratch_operands = 1 : i64, tpu.core_type = #tpu.core_type<tc>, window_params = [{transform_indices = @transform_0, window_bounds = array<i64: 8, 3>}, {pipeline_mode = #tpu.pipeline_mode<synchronous>, transform_indices = @transform_1, window_bounds = array<i64: 8, 128>}, {pipeline_mode = #tpu.pipeline_mode<synchronous>, transform_indices = @transform_2, window_bounds = array<i64: 1, 128>}, {pipeline_mode = #tpu.pipeline_mode<synchronous>, transform_indices = @transform_3, window_bounds = array<i64: 128, 128>}, {pipeline_mode = #tpu.pipeline_mode<synchronous>, transform_indices = @transform_4, window_bounds = array<i64: 1, 128>}, {pipeline_mode = #tpu.pipeline_mode<synchronous>, transform_indices = @transform_5, window_bounds = array<i64: 128, 128>}, {pipeline_mode = #tpu.pipeline_mode<synchronous>, transform_indices = @transform_6, window_bounds = array<i64: 1, 128>}, {transform_indices = @transform_7, window_bounds = array<i64: 8, 3>}]} {
    %cst = arith.constant 0.000000e+00 : f32
    %0 = vector.broadcast %cst : f32 to vector<8x8xf32>
    %c0 = arith.constant 0 : index
    %c0_0 = arith.constant 0 : index
    %1 = vector.load %arg9[%c0, %c0_0] : memref<8x8xf32, #tpu.memory_space<vmem>>, vector<8x8xf32>
    tpu.vector_store %arg9[%c0, %c0_0], %0 {strides = array<i32>} : memref<8x8xf32, #tpu.memory_space<vmem>>, vector<8x8xf32>,
    %c0_1 = arith.constant 0 : index
    %c0_2 = arith.constant 0 : index
    %2 = vector.load %arg1[%c0_1, %c0_2] : memref<8x3xf32, #tpu.memory_space<vmem>>, vector<8x3xf32>
    %c0_3 = arith.constant 0 : index
    %c0_4 = arith.constant 0 : index
    %3 = vector.load %arg9[%c0_3, %c0_4] : memref<8x8xf32, #tpu.memory_space<vmem>>, vector<8x3xf32>
    tpu.vector_store %arg9[%c0_3, %c0_4], %2 {strides = array<i32>} : memref<8x8xf32, #tpu.memory_space<vmem>>, vector<8x3xf32>,
    %c0_5 = arith.constant 0 : index
    %c0_6 = arith.constant 0 : index
    %4 = vector.load %arg9[%c0_5, %c0_6] : memref<8x8xf32, #tpu.memory_space<vmem>>, vector<8x8xf32>
    %c0_7 = arith.constant 0 : index
    %c0_8 = arith.constant 0 : index
    %5 = vector.load %arg2[%c0_7, %c0_8] : memref<8x128xf32, #tpu.memory_space<vmem>>, vector<8x128xf32>
    %cst_9 = arith.constant dense<0.000000e+00> : vector<8x128xf32>
    %6 = tpu.matmul %4, %5, %cst_9 {dimension_numbers = #tpu.dot_dimension_numbers<[1], [0], [0], [1], [0, 0, 1, 1], [], []>} : vector<8x8xf32>, vector<8x128xf32>, vector<8x128xf32> -> vector<8x128xf32>
    %c0_10 = arith.constant 0 : index
    %c0_11 = arith.constant 0 : index
    %7 = vector.load %arg3[%c0_10, %c0_11] : memref<1x128xf32, #tpu.memory_space<vmem>>, vector<1x128xf32>
    %8 = vector.broadcast %7 : vector<1x128xf32> to vector<8x128xf32>
    %9 = arith.addf %6, %8 : vector<8x128xf32>
    %cst_12 = arith.constant 0.000000e+00 : f32
    %10 = vector.broadcast %cst_12 : f32 to vector<8x128xf32>
    %11 = arith.maximumf %9, %10 : vector<8x128xf32>
    %12 = arith.truncf %11 : vector<8x128xf32> to vector<8x128xbf16>
    %c0_13 = arith.constant 0 : index
    %c0_14 = arith.constant 0 : index
    %13 = vector.load %arg4[%c0_13, %c0_14] : memref<128x128xbf16, #tpu.memory_space<vmem>>, vector<128x128xbf16>
    %cst_15 = arith.constant dense<0.000000e+00> : vector<8x128xf32>
    %14 = tpu.matmul %12, %13, %cst_15 {dimension_numbers = #tpu.dot_dimension_numbers<[1], [0], [0], [1], [0, 0, 1, 1], [], []>} : vector<8x128xbf16>, vector<128x128xbf16>, vector<8x128xf32> -> vector<8x128xf32>
    %c0_16 = arith.constant 0 : index
    %c0_17 = arith.constant 0 : index
    %15 = vector.load %arg5[%c0_16, %c0_17] : memref<1x128xf32, #tpu.memory_space<vmem>>, vector<1x128xf32>
    %16 = vector.broadcast %15 : vector<1x128xf32> to vector<8x128xf32>
    %17 = arith.addf %14, %16 : vector<8x128xf32>
    %cst_18 = arith.constant 0.000000e+00 : f32
    %18 = vector.broadcast %cst_18 : f32 to vector<8x128xf32>
    %19 = arith.maximumf %17, %18 : vector<8x128xf32>
    %20 = arith.truncf %19 : vector<8x128xf32> to vector<8x128xbf16>
    %c0_19 = arith.constant 0 : index
    %c0_20 = arith.constant 0 : index
    %21 = vector.load %arg6[%c0_19, %c0_20] : memref<128x128xbf16, #tpu.memory_space<vmem>>, vector<128x128xbf16>
    %cst_21 = arith.constant dense<0.000000e+00> : vector<8x128xf32>
    %22 = tpu.matmul %20, %21, %cst_21 {dimension_numbers = #tpu.dot_dimension_numbers<[1], [0], [0], [1], [0, 0, 1, 1], [], []>} : vector<8x128xbf16>, vector<128x128xbf16>, vector<8x128xf32> -> vector<8x128xf32>
    %c0_22 = arith.constant 0 : index
    %c0_23 = arith.constant 0 : index
    %23 = vector.load %arg7[%c0_22, %c0_23] : memref<1x128xf32, #tpu.memory_space<vmem>>, vector<1x128xf32>
    %24 = vector.broadcast %23 : vector<1x128xf32> to vector<8x128xf32>
    %25 = arith.addf %22, %24 : vector<8x128xf32>
    %26 = vector.extract_strided_slice %25 {offsets = [0, 0], sizes = [8, 3], strides = [1, 1]} : vector<8x128xf32> to vector<8x3xf32>
    %27 = tpu.iota {dimensions = array<i32: 1>} : vector<8x3xi32>
    %c1_i32 = arith.constant 1 : i32
    %28 = vector.broadcast %c1_i32 : i32 to vector<8x3xi32>
    %29 = arith.cmpi ne, %27, %28 : vector<8x3xi32>
    %cst_24 = arith.constant 0.000000e+00 : f32
    %30 = vector.broadcast %cst_24 : f32 to vector<8x3xf32>
    %31 = arith.maximumf %26, %30 : vector<8x3xf32>
    %32 = arith.select %29, %31, %26 : vector<8x3xi1>, vector<8x3xf32>
    %c0_25 = arith.constant 0 : index
    %c0_26 = arith.constant 0 : index
    %33 = vector.load %arg8[%c0_25, %c0_26] : memref<8x3xf32, #tpu.memory_space<vmem>>, vector<8x3xf32>
    tpu.vector_store %arg8[%c0_25, %c0_26], %32 {strides = array<i32>} : memref<8x3xf32, #tpu.memory_space<vmem>>, vector<8x3xf32>,
    return
  }
  func.func @transform_0(%arg0: i32) -> (i32, i32) {
    %c0_i32 = arith.constant 0 : i32
    %c0_i32_0 = arith.constant 0 : i32
    return %arg0, %c0_i32 : i32, i32
  }
  func.func @transform_1(%arg0: i32) -> (i32, i32) {
    %c0_i32 = arith.constant 0 : i32
    %c0_i32_0 = arith.constant 0 : i32
    %c0_i32_1 = arith.constant 0 : i32
    return %c0_i32, %c0_i32_0 : i32, i32
  }
  func.func @transform_2(%arg0: i32) -> (i32, i32) {
    %c0_i32 = arith.constant 0 : i32
    %c0_i32_0 = arith.constant 0 : i32
    %c0_i32_1 = arith.constant 0 : i32
    return %c0_i32, %c0_i32_0 : i32, i32
  }
  func.func @transform_3(%arg0: i32) -> (i32, i32) {
    %c0_i32 = arith.constant 0 : i32
    %c0_i32_0 = arith.constant 0 : i32
    %c0_i32_1 = arith.constant 0 : i32
    return %c0_i32, %c0_i32_0 : i32, i32
  }
  func.func @transform_4(%arg0: i32) -> (i32, i32) {
    %c0_i32 = arith.constant 0 : i32
    %c0_i32_0 = arith.constant 0 : i32
    %c0_i32_1 = arith.constant 0 : i32
    return %c0_i32, %c0_i32_0 : i32, i32
  }
  func.func @transform_5(%arg0: i32) -> (i32, i32) {
    %c0_i32 = arith.constant 0 : i32
    %c0_i32_0 = arith.constant 0 : i32
    %c0_i32_1 = arith.constant 0 : i32
    return %c0_i32, %c0_i32_0 : i32, i32
  }
  func.func @transform_6(%arg0: i32) -> (i32, i32) {
    %c0_i32 = arith.constant 0 : i32
    %c0_i32_0 = arith.constant 0 : i32
    %c0_i32_1 = arith.constant 0 : i32
    return %c0_i32, %c0_i32_0 : i32, i32
  }
  func.func @transform_7(%arg0: i32) -> (i32, i32) {
    %c0_i32 = arith.constant 0 : i32
    %c0_i32_0 = arith.constant 0 : i32
    return %arg0, %c0_i32 : i32, i32
  }
}

</mosaic_0001>

<bundles_post_ra>
// kernel: tpu_custom_call.1
= control target key start
LH: loop header
LB: loop body
LE: loop exit
PB: predicated region body
PF: predicated region fallthrough
CT: control target
= control target key end

     0   :  { %12 = vsyncpa [#allocation4], 0  ;;  %s651_s0 = inlined_call_operand.vmem [shape: f32[8,3], index: 0, kind: input, shape index: {}]   ;;  %s652_s1 = inlined_call_operand.vmem [shape: f32[8,128], index: 1, kind: input, shape index: {}]   ;;  %s653_s2 = inlined_call_operand.vmem [shape: f32[1,128], index: 2, kind: input, shape index: {}]   ;;  %s654_s3 = inlined_call_operand.hbm [shape: bf16[128,128], index: 3, kind: input, shape index: {}]   ;;  %s655_s4 = inlined_call_operand.vmem [shape: f32[1,128], index: 4, kind: input, shape index: {}]   ;;  %s656_s5 = inlined_call_operand.hbm [shape: bf16[128,128], index: 5, kind: input, shape index: {}]   ;;  %s657_s6 = inlined_call_operand.vmem [shape: f32[1,128], index: 6, kind: input, shape index: {}]   ;;  %s658_s7 = inlined_call_operand.vmem [shape: f32[8,3], index: 7, kind: output, shape index: {}]  }
   0x1   :  { %13 = vsyncpa [#allocation6], 0  ;;  %s535_s24 = smov [#allocation3]   ;;  %s487_s28 = scalar_lea.hbm %s654_s3, 1024 }
   0x2   :  { %s25_s25 = sshll.u32 %s535_s24, 4  ;;  %p488_p0 = scmp.ne.s32.totalorder %s654_s3, %s487_s28  ;;  %s26_s25 = int_to_ptr.vmem [resolvable:$true] %s25_s25 }
   0x3   :  { %p491_p1 = scmp.lt.u32.totalorder %s487_s28, %s654_s3 }
   0x5   :  { %p493_p2 = pnand %p491_p1, %p488_p0 }
   0x7   :  { %496 = shalt.err (!%p493_p2)
}
   0x8   :  { %s497_s10 = scalar_lea.vmem %s26_s25, 1024  ;;  %p502_p4 = scmp.lt.s32.totalorder %s26_s25, %s26_s25 }
   0x9   :  { %p498_p3 = scmp.ne.s32.totalorder %s26_s25, %s497_s10  ;;  %p503_p5 = scmp.lt.s32.totalorder %s497_s10, %s497_s10 }
   0xb   :  { %p504_p6 = por %p503_p5, %p502_p4 }
   0xd   :  { %p505_p7 = pnand %p504_p6, %p498_p3 }
   0xf   :  { %508 = shalt.err (!%p505_p7)
}
  0x10   :  { %s536_s11 = smov 64   ;;  %s537_s12 = smov 4  }
  0x11   :  { %31 = dma.hbm_to_vmem [thread:$0]  %s654_s3, 1024, %s26_s25, [#allocation4], %s536_s11, %s536_s11, %s537_s12  }
  0x12   :  { %s538_s15 = smov [#allocation5]   ;;  %s509_s19 = scalar_lea.hbm %s656_s5, 1024 }
  0x13   :  { %s39_s16 = sshll.u32 %s538_s15, 4  ;;  %p510_p8 = scmp.ne.s32.totalorder %s656_s5, %s509_s19  ;;  %s40_s16 = int_to_ptr.vmem [resolvable:$true] %s39_s16 }
  0x14   :  { %p513_p9 = scmp.lt.u32.totalorder %s509_s19, %s656_s5 }
  0x16   :  { %p515_p10 = pnand %p513_p9, %p510_p8 }
  0x18   :  { %518 = shalt.err (!%p515_p10)
}
  0x19   :  { %s519_s24 = scalar_lea.vmem %s40_s16, 1024  ;;  %p524_p12 = scmp.lt.s32.totalorder %s40_s16, %s40_s16 }
  0x1a   :  { %p520_p11 = scmp.ne.s32.totalorder %s40_s16, %s519_s24  ;;  %p525_p13 = scmp.lt.s32.totalorder %s519_s24, %s519_s24 }
  0x1c   :  { %p526_p0 = por %p525_p13, %p524_p12 }
  0x1e   :  { %p527_p1 = pnand %p526_p0, %p520_p11 }
  0x20   :  { %530 = shalt.err (!%p527_p1)
}
  0x21   :  { %45 = dma.hbm_to_vmem [thread:$0]  %s656_s5, 1024, %s40_s16, [#allocation6], %s536_s11, %s536_s11, %s537_s12  }
  0x22   :  { %531 = dma.done.wait [#allocation4], 1024  }
  0x23   :  { %532 = vsyncadd [#allocation4], 4294966272 }
  0x24   :  { %533 = dma.done.wait [#allocation6], 1024  }
  0x25   :  { %534 = vsyncadd [#allocation6], 4294966272  ;;  %vm55_vm0 = vcmask 64512   ;;  %v539_v0 = vmov 0.0   ;;  %vm540_vm1 = vmmov 0   ;;  %vm58_vm2 = vcmask 23552  }
  0x26   :  { %420 = vmatprep.subr.mxu0 %v539_v0  ;;  %422 = vmatprep.mubr.msk.f32.mxu0 %vm540_vm1, %v539_v0  ;;  %56 = vst.msk [vmem:[#allocation2] sm:$0xff] %vm55_vm0, %v539_v0  ;;  %v61_v1 = vld [vmem:[%s652_s1] sm:$0xff]  ;;  %v471_v3 = vld [vmem:[#allocation3] sm:$0xff]   ;;  %v472_v4 = vld [vmem:[#allocation3 + $0x8] sm:$0xff]   ;;  %v368_v34 = vlaneseq }
  0x27   :  { %425 = vmatprep.subr.bf16.mxu1 %v539_v0  ;;  %441 = vmatprep.mubr.msk.bf16.mxu1 %vm540_vm1, %v539_v0  ;;  %v57_v2 = vld [vmem:[%s651_s0] sm:$0xff]  ;;  %v474_v7 = vld [vmem:[#allocation3 + $0x18] sm:$0xff]   ;;  %v475_v8 = vld [vmem:[#allocation3 + $0x20] sm:$0xff]  }
  0x28   :  { %421 = vmatpush3.msra.mxu0 %v61_v1  ;;  %59 = vst.msk [vmem:[#allocation2] sm:$0xff] %vm58_vm2, %v57_v2  ;;  %426 = vmatpush3.bf16.msra.mxu1 %v471_v3  ;;  %v473_v5 = vld [vmem:[#allocation3 + $0x10] sm:$0xff]   ;;  %v476_v9 = vld [vmem:[#allocation3 + $0x28] sm:$0xff]   ;;  %v478_v11 = vld [vmem:[#allocation3 + $0x38] sm:$0xff]   ;;  %v369_v36 = vand.u32 127, %v368_v34 }
  0x29   :  { %445 = vmatprep.subr.bf16.mxu0 %v539_v0  ;;  %427 = vmatprep.subr.bf16.mxu1 %v539_v0  ;;  %v477_v10 = vld [vmem:[#allocation3 + $0x30] sm:$0xff]   ;;  %v479_v12 = vld [vmem:[#allocation5] sm:$0xff]   ;;  %v480_v13 = vld [vmem:[#allocation5 + $0x8] sm:$0xff]  }
  0x2a   :  { %v481_v14 = vld [vmem:[#allocation5 + $0x10] sm:$0xff]   ;;  %v482_v15 = vld [vmem:[#allocation5 + $0x18] sm:$0xff]   ;;  %v483_v16 = vld [vmem:[#allocation5 + $0x20] sm:$0xff]   ;;  %vm370_vm3 = vcmp.ne.s32.totalorder %v369_v36, 1 }
  0x2b   :  { %v484_v17 = vld [vmem:[#allocation5 + $0x28] sm:$0xff]   ;;  %v380_v18 = vld [vmem:[%s653_s2] ss:$0 sm:$0xff]  ;;  %v486_v25 = vld [vmem:[#allocation5 + $0x38] sm:$0xff]  }
  0x2c   :  { %428 = vmatpush3.bf16.msra.mxu1 %v472_v4  ;;  %v485_v24 = vld [vmem:[#allocation5 + $0x30] sm:$0xff]  }
  0x2d   :  { %429 = vmatprep.subr.bf16.mxu1 %v539_v0  ;;  %v382_v26 = vld [vmem:[%s655_s4] ss:$0 sm:$0xff] }
  0x2e   :  { %v391_v35 = vld [vmem:[%s657_s6] ss:$0 sm:$0xff] }
  0x2f   :  { %v60_v6 = vld [vmem:[#allocation2] sm:$0xff] }
  0x30   :  { %423 = vmatmul.mubr.msk.f32.vlgmr.msra.gmra.mrb[0].mxu0 %vm55_vm0, %v60_v6  ;;  %430 = vmatpush3.bf16.msra.mxu1 %v473_v5 }
  0x31   :  { %461 = vmatprep.mubr.msk.bf16.mxu0 %vm540_vm1, %v539_v0  ;;  %431 = vmatprep.subr.bf16.mxu1 %v539_v0 }
  0x32   :  { %446 = vmatpush3.bf16.msra.mxu0 %v479_v12 }
  0x33   :  { %447 = vmatprep.subr.bf16.mxu0 %v539_v0 }
  0x34   :  { %432 = vmatpush3.bf16.msra.mxu1 %v474_v7 }
  0x35   :  { %433 = vmatprep.subr.bf16.mxu1 %v539_v0 }
  0x36   :  { %448 = vmatpush3.bf16.msra.mxu0 %v480_v13 }
  0x37   :  { %449 = vmatprep.subr.bf16.mxu0 %v539_v0 }
  0x38   :  { %434 = vmatpush3.bf16.msra.mxu1 %v475_v8 }
  0x39   :  { %435 = vmatprep.subr.bf16.mxu1 %v539_v0 }
  0x3a   :  { %450 = vmatpush3.bf16.msra.mxu0 %v481_v14 }
  0x3b   :  { %451 = vmatprep.subr.bf16.mxu0 %v539_v0 }
  0x3c   :  { %436 = vmatpush3.bf16.msra.mxu1 %v476_v9 }
  0x3d   :  { %437 = vmatprep.subr.bf16.mxu1 %v539_v0 }
  0x3e   :  { %452 = vmatpush3.bf16.msra.mxu0 %v482_v15 }
  0x3f   :  { %453 = vmatprep.subr.bf16.mxu0 %v539_v0 }
  0x40   :  { %438 = vmatpush3.bf16.msra.mxu1 %v477_v10 }
  0x41   :  { %439 = vmatprep.subr.bf16.mxu1 %v539_v0 }
  0x42   :  { %454 = vmatpush3.bf16.msra.mxu0 %v483_v16 }
  0x43   :  { %455 = vmatprep.subr.bf16.mxu0 %v539_v0 }
  0x44   :  { %440 = vmatpush3.bf16.msra.mxu1 %v478_v11 }
  0x46   :  { %456 = vmatpush3.bf16.msra.mxu0 %v484_v17 }
  0x47   :  { %457 = vmatprep.subr.bf16.mxu0 %v539_v0 }
  0x4a   :  { %458 = vmatpush3.bf16.msra.mxu0 %v485_v24 }
  0x4b   :  { %459 = vmatprep.subr.bf16.mxu0 %v539_v0 }
  0x4e   :  { %460 = vmatpush3.bf16.msra.mxu0 %v486_v25 }
 0x103   :  { %v138_v19 = vpop.f32.mrb[0].mxu0 }
 0x104   :  { %v139_v20 = vadd.f32 %v380_v18, %v138_v19  ;;  %v424_v21 = vpop.f32.mrb[1].mxu0 }
 0x106   :  { %v142_v22 = vmax.f32 %v139_v20, 0.0 }
 0x108   :  { %v143_v23 = vpack.c.bf16 %v142_v22, %v142_v22 }
 0x10a   :  { %442 = vmatmul.mubr.bf16.vlgmr.msra.gmra.mrb[0].mxu1 %v143_v23 }
 0x1dd   :  { %v249_v27 = vpop.f32.mrb[0].mxu1 }
 0x1de   :  { %v250_v28 = vadd.f32 %v382_v26, %v249_v27  ;;  %v443_v29 = vpop.f32.mrb[1].mxu1 }
 0x1df   :  { %v252_v30 = vpop.f32.mrb[2].mxu1 }
 0x1e0   :  { %v255_v31 = vmax.f32 %v250_v28, 0.0  ;;  %v444_v32 = vpop.f32.mrb[3].mxu1 }
 0x1e2   :  { %v256_v33 = vpack.c.bf16 %v255_v31, %v255_v31 }
 0x1e4   :  { %462 = vmatmul.mubr.bf16.vlgmr.msra.gmra.mrb[4].mxu0 %v256_v33 }
 0x2b7   :  { %v362_v37 = vpop.f32.mrb[4].mxu0 }
 0x2b8   :  { %v363_v38 = vadd.f32 %v391_v35, %v362_v37  ;;  %v463_v39 = vpop.f32.mrb[5].mxu0 }
 0x2b9   :  { %v365_v40 = vpop.f32.mrb[6].mxu0 }
 0x2ba   :  { %v371_v41 = vmax.f32 %v363_v38, 0.0  ;;  %v464_v42 = vpop.f32.mrb[7].mxu0 }
 0x2bc   :  { %v372_v43 = vsel %vm370_vm3, %v371_v41, %v363_v38 }
 0x2bd   :  { %373 = vst.msk [vmem:[%s658_s7] sm:$0xff] %vm58_vm2, %v372_v43 }
 0x2be   :  { %378 = vsyncpa [#allocation4], 1 }
 0x2bf   :  { %379 = vsyncpa [#allocation6], 1 }

</bundles_post_ra>
